<compile_context>
chip_gen: v6e
topology: v6e:2x2x1
jax: 0.10.0
libtpu: 0.0.40
codegen_flags: <defaults>
</compile_context>

<pallas_src>
import jax
import jax.numpy as jnp
from jax.experimental import pallas as pl
from jax.experimental.pallas import tpu as pltpu  # noqa: F401  (TPU backend assumed)

# ---- configuration (consistent with the torch module's __init__) ----
X_NUM = 4                       # data_config.x_num  (input_dim == output_dim)
NUM_SENSORS = 8                 # input_len // input_step
BASIS = 6                       # model_config.basis_dim
HID = 100                       # hidden width used by mesh and OneInputBasis
HIDP = 128                      # lane-aligned padded hidden width
S = NUM_SENSORS * X_NUM         # branch input width = 32
B = 2                           # batch
M = 16                          # query points per batch element


def deeponet_kernel(q_ref, v_ref, w3b3_ref, w456_ref, b456_ref, w7_ref,
                    w1p_ref, b1p_ref, w2_ref, out_ref):
    f32 = jnp.float32
    bf16 = jnp.bfloat16
    bm = q_ref.shape[0]                      # B*M
    bsz = v_ref.shape[0]                     # B
    m = bm // bsz                            # M
    hidp = w456_ref.shape[1]                 # HIDP
    basis = w7_ref.shape[1]                  # BASIS
    xn = out_ref.shape[1]                    # X_NUM

    # ---------------- trunk (mesh): 1 -> HIDP x4 (tanh) -> BASIS -------------
    q = q_ref[...]                                              # (BM, 1) f32
    # first layer has contraction dim 1 -> broadcasted multiply (stays f32)
    h = jnp.tanh(q * w3b3_ref[0:1, :] + w3b3_ref[1:2, :])       # (BM, HIDP)
    for i in range(3):                                          # static unroll
        h = jnp.tanh(jnp.dot(h.astype(bf16), w456_ref[i],
                             preferred_element_type=f32) + b456_ref[i:i + 1, :])
    t = jnp.dot(h.astype(bf16), w7_ref[...],
                preferred_element_type=f32)                     # (BM, BASIS) f32

    # ---------------- branch (node): packed layer 1, per-basis layer 2 -------
    v = v_ref[...].astype(bf16)                                 # (B, S)
    hb = jnp.tanh(jnp.dot(v, w1p_ref[...],
                          preferred_element_type=f32) + b1p_ref[...])  # (B, BASIS*HIDP) f32
    hb = hb.astype(bf16)
    # layer 2: statically unrolled per-basis dots (dense weights, no block-diag)
    k1 = [jnp.dot(hb[:, k * hidp:(k + 1) * hidp], w2_ref[k],
                  preferred_element_type=f32) for k in range(basis)]   # each (B, XN)

    # ---------------- combine: out[b*M+r, o] = sum_k t[b*M+r, k] * k1[k][b, o]
    # Pure VPU broadcast multiply-adds -- no iota constant matrices, no matmuls.
    for b in range(bsz):                                        # static unroll (B tiny)
        t_b = t[b * m:(b + 1) * m, :]                           # (M, BASIS)
        acc = t_b[:, 0:1] * k1[0][b:b + 1, :]                   # (M, XN)
        for k in range(1, basis):
            acc = acc + t_b[:, k:k + 1] * k1[k][b:b + 1, :]
        out_ref[b * m:(b + 1) * m, :] = acc                     # sublane-aligned writes


def pack_params(p):
    """One-time packing: zero-pad HID->HIDP, consolidate, cast weights to bf16."""
    ph = HIDP - HID
    f32, bf16 = jnp.float32, jnp.bfloat16

    w3 = jnp.pad(p["w3"], ((0, 0), (0, ph)))                    # (1, HIDP)
    b3 = jnp.pad(p["b3"], ((0, 0), (0, ph)))                    # (1, HIDP)
    w3b3 = jnp.concatenate([w3, b3], axis=0).astype(f32)        # (2, HIDP)   f32

    w456 = jnp.stack([jnp.pad(p[k], ((0, ph), (0, ph)))
                      for k in ("w4", "w5", "w6")]).astype(bf16)  # (3, HIDP, HIDP) bf16
    b456 = jnp.stack([jnp.pad(p[k][0], (0, ph))
                      for k in ("b4", "b5", "b6")]).astype(f32)   # (3, HIDP)  f32
    w7 = jnp.pad(p["w7"], ((0, ph), (0, 0))).astype(bf16)         # (HIDP, BASIS) bf16

    # branch layer 1 packed along lanes: W1p[s, k*HIDP + h] = w1s[k, s, h]
    w1pad = jnp.pad(p["w1s"], ((0, 0), (0, 0), (0, ph)))          # (BASIS, S, HIDP)
    w1p = jnp.transpose(w1pad, (1, 0, 2)).reshape(S, BASIS * HIDP).astype(bf16)
    b1p = jnp.pad(p["b1s"], ((0, 0), (0, ph))).reshape(1, BASIS * HIDP).astype(f32)

    # branch layer 2 kept dense, per-basis: (BASIS, HIDP, X_NUM)
    w2 = jnp.pad(p["w2s"], ((0, 0), (0, ph), (0, 0))).astype(bf16)
    return w3b3, w456, b456, w7, w1p, b1p, w2


@jax.jit
def deeponet_forward(querypoint, value_at_sensor, packed):
    """querypoint: (B, M, 1); value_at_sensor: (B, num_sensors, x_num)."""
    bsz, m, _ = querypoint.shape
    bm = bsz * m
    q2 = querypoint.reshape(bm, 1)                              # (B*M, 1)
    v2 = value_at_sensor.reshape(bsz, -1)                       # (B, S) row-major == torch .view

    w3b3, w456, b456, w7, w1p, b1p, w2 = packed
    basis = w7.shape[1]

    flops = 2 * (bm * HIDP                                      # trunk layer 3 (K=1)
                 + 3 * bm * HIDP * HIDP                         # trunk layers 4-6
                 + bm * HIDP * basis                            # trunk layer 7
                 + bsz * S * basis * HIDP                       # branch layer 1 (packed)
                 + basis * bsz * HIDP * X_NUM                   # branch layer 2 (per-basis)
                 + bm * basis * X_NUM)                          # combine (VPU)
    transcendentals = 4 * bm * HIDP + bsz * basis * HIDP
    inputs = (q2, v2, w3b3, w456, b456, w7, w1p, b1p, w2)
    bytes_accessed = sum(int(x.size) * x.dtype.itemsize for x in inputs) \
        + bm * X_NUM * 4

    out_flat = pl.pallas_call(
        deeponet_kernel,
        out_shape=jax.ShapeDtypeStruct((bm, X_NUM), jnp.float32),
        cost_estimate=pl.CostEstimate(flops=flops,
                                      transcendentals=transcendentals,
                                      bytes_accessed=bytes_accessed),
    )(*inputs)
    return out_flat.reshape(bsz, m, X_NUM)


def deeponet_reference(querypoint, value_at_sensor, p):
    """Pure-JAX f32 reference matching the PyTorch forward semantics."""
    h = jnp.tanh(querypoint @ p["w3"] + p["b3"])
    h = jnp.tanh(h @ p["w4"] + p["b4"])
    h = jnp.tanh(h @ p["w5"] + p["b5"])
    h = jnp.tanh(h @ p["w6"] + p["b6"])
    t = h @ p["w7"]                                             # (B, M, BASIS)
    vf = value_at_sensor.reshape(value_at_sensor.shape[0], 1, -1)       # (B, 1, S)
    hb = jnp.tanh(jnp.einsum("bxs,ksh->bkh", vf, p["w1s"]) + p["b1s"][None])
    k1 = jnp.einsum("bkh,kho->bko", hb, p["w2s"])               # (B, BASIS, X_NUM)
    return jnp.einsum("bmk,bko->bmo", t, k1)                    # (B, M, X_NUM)


def init_params(key):
    """Deterministic synthetic parameters (shapes follow the torch module)."""
    def linear(k, fan_in, fan_out, bias=True):
        k1, k2 = jax.random.split(k)
        bound = 1.0 / (fan_in ** 0.5)
        w = jax.random.uniform(k1, (fan_in, fan_out), jnp.float32, -bound, bound)
        if not bias:
            return w, None
        b = jax.random.uniform(k2, (1, fan_out), jnp.float32, -bound, bound)
        return w, b

    keys = jax.random.split(key, 6 + 2 * BASIS)
    p = {}
    p["w3"], p["b3"] = linear(keys[0], 1, HID)
    p["w4"], p["b4"] = linear(keys[1], HID, HID)
    p["w5"], p["b5"] = linear(keys[2], HID, HID)
    p["w6"], p["b6"] = linear(keys[3], HID, HID)
    p["w7"], _ = linear(keys[4], HID, BASIS, bias=False)        # hidden_dim * output_dim = BASIS * 1
    w1s, b1s, w2s = [], [], []
    for i in range(BASIS):
        w1, b1 = linear(keys[5 + 2 * i], S, HID)
        w2, _ = linear(keys[6 + 2 * i], HID, X_NUM, bias=False)
        w1s.append(w1); b1s.append(b1[0]); w2s.append(w2)
    p["w1s"] = jnp.stack(w1s)                                   # (BASIS, S, HID)
    p["b1s"] = jnp.stack(b1s)                                   # (BASIS, HID)
    p["w2s"] = jnp.stack(w2s)                                   # (BASIS, HID, X_NUM)
    return p


if __name__ == "__main__":
    root = jax.random.PRNGKey(0)
    kq, kv, kp = jax.random.split(root, 3)

    querypoint = jax.random.normal(kq, (B, M, 1), jnp.float32)
    value_at_sensor = jax.random.normal(kv, (B, NUM_SENSORS, X_NUM), jnp.float32)
    params = init_params(kp)

    # one-time packing (outside the per-call path)
    packed = jax.tree_util.tree_map(jax.block_until_ready, pack_params(params))

    out = deeponet_forward(querypoint, value_at_sensor, packed)
    out = jax.block_until_ready(out)

    ref = deeponet_reference(querypoint, value_at_sensor, params)
    assert out.shape == (B, M, X_NUM)
    # bf16 matmul operands with f32 accumulation -> loosened tolerance vs f32 ref
    assert jnp.allclose(out, ref, atol=5e-2, rtol=5e-2), "mismatch vs JAX reference"

    print("KERNEL_OK")
</pallas_src>

<mosaic_0001>
module attributes {stable_mosaic.version = 11 : i64} {
  func.func @deeponet_kernel(%arg0: memref<32x1xf32, #tpu.memory_space<vmem>>, %arg1: memref<2x32xf32, #tpu.memory_space<vmem>>, %arg2: memref<2x128xf32, #tpu.memory_space<vmem>>, %arg3: memref<3x128x128xbf16, #tpu.memory_space<vmem>>, %arg4: memref<3x128xf32, #tpu.memory_space<vmem>>, %arg5: memref<128x6xbf16, #tpu.memory_space<vmem>>, %arg6: memref<32x768xbf16, #tpu.memory_space<vmem>>, %arg7: memref<1x768xf32, #tpu.memory_space<vmem>>, %arg8: memref<6x128x4xbf16, #tpu.memory_space<vmem>>, %arg9: memref<32x4xf32, #tpu.memory_space<vmem>>) attributes {dimension_semantics = [], scalar_prefetch = 0 : i64, scratch_operands = 0 : i64, tpu.core_type = #tpu.core_type<tc>} {
    %c0 = arith.constant 0 : index
    %c0_0 = arith.constant 0 : index
    %0 = vector.load %arg0[%c0, %c0_0] : memref<32x1xf32, #tpu.memory_space<vmem>>, vector<32x1xf32>
    %c0_1 = arith.constant 0 : index
    %c0_2 = arith.constant 0 : index
    %1 = vector.load %arg2[%c0_1, %c0_2] : memref<2x128xf32, #tpu.memory_space<vmem>>, vector<1x128xf32>
    %2 = vector.broadcast %0 : vector<32x1xf32> to vector<32x128xf32>
    %3 = vector.broadcast %1 : vector<1x128xf32> to vector<32x128xf32>
    %4 = arith.mulf %2, %3 : vector<32x128xf32>
    %c1 = arith.constant 1 : index
    %c0_3 = arith.constant 0 : index
    %5 = vector.load %arg2[%c1, %c0_3] : memref<2x128xf32, #tpu.memory_space<vmem>>, vector<1x128xf32>
    %6 = vector.broadcast %5 : vector<1x128xf32> to vector<32x128xf32>
    %7 = arith.addf %4, %6 : vector<32x128xf32>
    %8 = math.tanh %7 : vector<32x128xf32>
    %9 = arith.truncf %8 : vector<32x128xf32> to vector<32x128xbf16>
    %c0_4 = arith.constant 0 : index
    %c0_5 = arith.constant 0 : index
    %c0_6 = arith.constant 0 : index
    %10 = vector.load %arg3[%c0_4, %c0_5, %c0_6] : memref<3x128x128xbf16, #tpu.memory_space<vmem>>, vector<1x128x128xbf16>
    %11 = vector.shape_cast %10 : vector<1x128x128xbf16> to vector<128x128xbf16>
    %cst = arith.constant dense<0.000000e+00> : vector<32x128xf32>
    %12 = tpu.matmul %9, %11, %cst {dimension_numbers = #tpu.dot_dimension_numbers<[1], [0], [0], [1], [0, 0, 1, 1], [], []>} : vector<32x128xbf16>, vector<128x128xbf16>, vector<32x128xf32> -> vector<32x128xf32>
    %c0_7 = arith.constant 0 : index
    %c0_8 = arith.constant 0 : index
    %13 = vector.load %arg4[%c0_7, %c0_8] : memref<3x128xf32, #tpu.memory_space<vmem>>, vector<1x128xf32>
    %14 = vector.broadcast %13 : vector<1x128xf32> to vector<32x128xf32>
    %15 = arith.addf %12, %14 : vector<32x128xf32>
    %16 = math.tanh %15 : vector<32x128xf32>
    %17 = arith.truncf %16 : vector<32x128xf32> to vector<32x128xbf16>
    %c1_9 = arith.constant 1 : index
    %c0_10 = arith.constant 0 : index
    %c0_11 = arith.constant 0 : index
    %18 = vector.load %arg3[%c1_9, %c0_10, %c0_11] : memref<3x128x128xbf16, #tpu.memory_space<vmem>>, vector<1x128x128xbf16>
    %19 = vector.shape_cast %18 : vector<1x128x128xbf16> to vector<128x128xbf16>
    %cst_12 = arith.constant dense<0.000000e+00> : vector<32x128xf32>
    %20 = tpu.matmul %17, %19, %cst_12 {dimension_numbers = #tpu.dot_dimension_numbers<[1], [0], [0], [1], [0, 0, 1, 1], [], []>} : vector<32x128xbf16>, vector<128x128xbf16>, vector<32x128xf32> -> vector<32x128xf32>
    %c1_13 = arith.constant 1 : index
    %c0_14 = arith.constant 0 : index
    %21 = vector.load %arg4[%c1_13, %c0_14] : memref<3x128xf32, #tpu.memory_space<vmem>>, vector<1x128xf32>
    %22 = vector.broadcast %21 : vector<1x128xf32> to vector<32x128xf32>
    %23 = arith.addf %20, %22 : vector<32x128xf32>
    %24 = math.tanh %23 : vector<32x128xf32>
    %25 = arith.truncf %24 : vector<32x128xf32> to vector<32x128xbf16>
    %c2 = arith.constant 2 : index
    %c0_15 = arith.constant 0 : index
    %c0_16 = arith.constant 0 : index
    %26 = vector.load %arg3[%c2, %c0_15, %c0_16] : memref<3x128x128xbf16, #tpu.memory_space<vmem>>, vector<1x128x128xbf16>
    %27 = vector.shape_cast %26 : vector<1x128x128xbf16> to vector<128x128xbf16>
    %cst_17 = arith.constant dense<0.000000e+00> : vector<32x128xf32>
    %28 = tpu.matmul %25, %27, %cst_17 {dimension_numbers = #tpu.dot_dimension_numbers<[1], [0], [0], [1], [0, 0, 1, 1], [], []>} : vector<32x128xbf16>, vector<128x128xbf16>, vector<32x128xf32> -> vector<32x128xf32>
    %c2_18 = arith.constant 2 : index
    %c0_19 = arith.constant 0 : index
    %29 = vector.load %arg4[%c2_18, %c0_19] : memref<3x128xf32, #tpu.memory_space<vmem>>, vector<1x128xf32>
    %30 = vector.broadcast %29 : vector<1x128xf32> to vector<32x128xf32>
    %31 = arith.addf %28, %30 : vector<32x128xf32>
    %32 = math.tanh %31 : vector<32x128xf32>
    %33 = arith.truncf %32 : vector<32x128xf32> to vector<32x128xbf16>
    %c0_20 = arith.constant 0 : index
    %c0_21 = arith.constant 0 : index
    %34 = vector.load %arg5[%c0_20, %c0_21] : memref<128x6xbf16, #tpu.memory_space<vmem>>, vector<128x6xbf16>
    %cst_22 = arith.constant dense<0.000000e+00> : vector<32x6xf32>
    %35 = tpu.matmul %33, %34, %cst_22 {dimension_numbers = #tpu.dot_dimension_numbers<[1], [0], [0], [1], [0, 0, 1, 1], [], []>} : vector<32x128xbf16>, vector<128x6xbf16>, vector<32x6xf32> -> vector<32x6xf32>
    %c0_23 = arith.constant 0 : index
    %c0_24 = arith.constant 0 : index
    %36 = vector.load %arg1[%c0_23, %c0_24] : memref<2x32xf32, #tpu.memory_space<vmem>>, vector<2x32xf32>
    %37 = arith.truncf %36 : vector<2x32xf32> to vector<2x32xbf16>
    %c0_25 = arith.constant 0 : index
    %c0_26 = arith.constant 0 : index
    %38 = vector.load %arg6[%c0_25, %c0_26] : memref<32x768xbf16, #tpu.memory_space<vmem>>, vector<32x768xbf16>
    %cst_27 = arith.constant dense<0.000000e+00> : vector<2x768xf32>
    %39 = tpu.matmul %37, %38, %cst_27 {dimension_numbers = #tpu.dot_dimension_numbers<[1], [0], [0], [1], [0, 0, 1, 1], [], []>} : vector<2x32xbf16>, vector<32x768xbf16>, vector<2x768xf32> -> vector<2x768xf32>
    %c0_28 = arith.constant 0 : index
    %c0_29 = arith.constant 0 : index
    %40 = vector.load %arg7[%c0_28, %c0_29] : memref<1x768xf32, #tpu.memory_space<vmem>>, vector<1x768xf32>
    %41 = vector.broadcast %40 : vector<1x768xf32> to vector<2x768xf32>
    %42 = arith.addf %39, %41 : vector<2x768xf32>
    %43 = math.tanh %42 : vector<2x768xf32>
    %44 = arith.truncf %43 : vector<2x768xf32> to vector<2x768xbf16>
    %45 = vector.extract_strided_slice %44 {offsets = [0, 0], sizes = [2, 128], strides = [1, 1]} : vector<2x768xbf16> to vector<2x128xbf16>
    %c0_30 = arith.constant 0 : index
    %c0_31 = arith.constant 0 : index
    %c0_32 = arith.constant 0 : index
    %46 = vector.load %arg8[%c0_30, %c0_31, %c0_32] : memref<6x128x4xbf16, #tpu.memory_space<vmem>>, vector<1x128x4xbf16>
    %47 = vector.shape_cast %46 : vector<1x128x4xbf16> to vector<128x4xbf16>
    %cst_33 = arith.constant dense<0.000000e+00> : vector<2x4xf32>
    %48 = tpu.matmul %45, %47, %cst_33 {dimension_numbers = #tpu.dot_dimension_numbers<[1], [0], [0], [1], [0, 0, 1, 1], [], []>} : vector<2x128xbf16>, vector<128x4xbf16>, vector<2x4xf32> -> vector<2x4xf32>
    %49 = vector.extract_strided_slice %44 {offsets = [0, 128], sizes = [2, 128], strides = [1, 1]} : vector<2x768xbf16> to vector<2x128xbf16>
    %c1_34 = arith.constant 1 : index
    %c0_35 = arith.constant 0 : index
    %c0_36 = arith.constant 0 : index
    %50 = vector.load %arg8[%c1_34, %c0_35, %c0_36] : memref<6x128x4xbf16, #tpu.memory_space<vmem>>, vector<1x128x4xbf16>
    %51 = vector.shape_cast %50 : vector<1x128x4xbf16> to vector<128x4xbf16>
    %cst_37 = arith.constant dense<0.000000e+00> : vector<2x4xf32>
    %52 = tpu.matmul %49, %51, %cst_37 {dimension_numbers = #tpu.dot_dimension_numbers<[1], [0], [0], [1], [0, 0, 1, 1], [], []>} : vector<2x128xbf16>, vector<128x4xbf16>, vector<2x4xf32> -> vector<2x4xf32>
    %53 = vector.extract_strided_slice %44 {offsets = [0, 256], sizes = [2, 128], strides = [1, 1]} : vector<2x768xbf16> to vector<2x128xbf16>
    %c2_38 = arith.constant 2 : index
    %c0_39 = arith.constant 0 : index
    %c0_40 = arith.constant 0 : index
    %54 = vector.load %arg8[%c2_38, %c0_39, %c0_40] : memref<6x128x4xbf16, #tpu.memory_space<vmem>>, vector<1x128x4xbf16>
    %55 = vector.shape_cast %54 : vector<1x128x4xbf16> to vector<128x4xbf16>
    %cst_41 = arith.constant dense<0.000000e+00> : vector<2x4xf32>
    %56 = tpu.matmul %53, %55, %cst_41 {dimension_numbers = #tpu.dot_dimension_numbers<[1], [0], [0], [1], [0, 0, 1, 1], [], []>} : vector<2x128xbf16>, vector<128x4xbf16>, vector<2x4xf32> -> vector<2x4xf32>
    %57 = vector.extract_strided_slice %44 {offsets = [0, 384], sizes = [2, 128], strides = [1, 1]} : vector<2x768xbf16> to vector<2x128xbf16>
    %c3 = arith.constant 3 : index
    %c0_42 = arith.constant 0 : index
    %c0_43 = arith.constant 0 : index
    %58 = vector.load %arg8[%c3, %c0_42, %c0_43] : memref<6x128x4xbf16, #tpu.memory_space<vmem>>, vector<1x128x4xbf16>
    %59 = vector.shape_cast %58 : vector<1x128x4xbf16> to vector<128x4xbf16>
    %cst_44 = arith.constant dense<0.000000e+00> : vector<2x4xf32>
    %60 = tpu.matmul %57, %59, %cst_44 {dimension_numbers = #tpu.dot_dimension_numbers<[1], [0], [0], [1], [0, 0, 1, 1], [], []>} : vector<2x128xbf16>, vector<128x4xbf16>, vector<2x4xf32> -> vector<2x4xf32>
    %61 = vector.extract_strided_slice %44 {offsets = [0, 512], sizes = [2, 128], strides = [1, 1]} : vector<2x768xbf16> to vector<2x128xbf16>
    %c4 = arith.constant 4 : index
    %c0_45 = arith.constant 0 : index
    %c0_46 = arith.constant 0 : index
    %62 = vector.load %arg8[%c4, %c0_45, %c0_46] : memref<6x128x4xbf16, #tpu.memory_space<vmem>>, vector<1x128x4xbf16>
    %63 = vector.shape_cast %62 : vector<1x128x4xbf16> to vector<128x4xbf16>
    %cst_47 = arith.constant dense<0.000000e+00> : vector<2x4xf32>
    %64 = tpu.matmul %61, %63, %cst_47 {dimension_numbers = #tpu.dot_dimension_numbers<[1], [0], [0], [1], [0, 0, 1, 1], [], []>} : vector<2x128xbf16>, vector<128x4xbf16>, vector<2x4xf32> -> vector<2x4xf32>
    %65 = vector.extract_strided_slice %44 {offsets = [0, 640], sizes = [2, 128], strides = [1, 1]} : vector<2x768xbf16> to vector<2x128xbf16>
    %c5 = arith.constant 5 : index
    %c0_48 = arith.constant 0 : index
    %c0_49 = arith.constant 0 : index
    %66 = vector.load %arg8[%c5, %c0_48, %c0_49] : memref<6x128x4xbf16, #tpu.memory_space<vmem>>, vector<1x128x4xbf16>
    %67 = vector.shape_cast %66 : vector<1x128x4xbf16> to vector<128x4xbf16>
    %cst_50 = arith.constant dense<0.000000e+00> : vector<2x4xf32>
    %68 = tpu.matmul %65, %67, %cst_50 {dimension_numbers = #tpu.dot_dimension_numbers<[1], [0], [0], [1], [0, 0, 1, 1], [], []>} : vector<2x128xbf16>, vector<128x4xbf16>, vector<2x4xf32> -> vector<2x4xf32>
    %69 = vector.extract_strided_slice %35 {offsets = [0, 0], sizes = [16, 6], strides = [1, 1]} : vector<32x6xf32> to vector<16x6xf32>
    %70 = vector.extract_strided_slice %69 {offsets = [0, 0], sizes = [16, 1], strides = [1, 1]} : vector<16x6xf32> to vector<16x1xf32>
    %71 = vector.extract_strided_slice %48 {offsets = [0, 0], sizes = [1, 4], strides = [1, 1]} : vector<2x4xf32> to vector<1x4xf32>
    %72 = vector.broadcast %70 : vector<16x1xf32> to vector<16x4xf32>
    %73 = vector.broadcast %71 : vector<1x4xf32> to vector<16x4xf32>
    %74 = arith.mulf %72, %73 : vector<16x4xf32>
    %75 = vector.extract_strided_slice %69 {offsets = [0, 1], sizes = [16, 1], strides = [1, 1]} : vector<16x6xf32> to vector<16x1xf32>
    %76 = vector.extract_strided_slice %52 {offsets = [0, 0], sizes = [1, 4], strides = [1, 1]} : vector<2x4xf32> to vector<1x4xf32>
    %77 = vector.broadcast %75 : vector<16x1xf32> to vector<16x4xf32>
    %78 = vector.broadcast %76 : vector<1x4xf32> to vector<16x4xf32>
    %79 = arith.mulf %77, %78 : vector<16x4xf32>
    %80 = arith.addf %74, %79 : vector<16x4xf32>
    %81 = vector.extract_strided_slice %69 {offsets = [0, 2], sizes = [16, 1], strides = [1, 1]} : vector<16x6xf32> to vector<16x1xf32>
    %82 = vector.extract_strided_slice %56 {offsets = [0, 0], sizes = [1, 4], strides = [1, 1]} : vector<2x4xf32> to vector<1x4xf32>
    %83 = vector.broadcast %81 : vector<16x1xf32> to vector<16x4xf32>
    %84 = vector.broadcast %82 : vector<1x4xf32> to vector<16x4xf32>
    %85 = arith.mulf %83, %84 : vector<16x4xf32>
    %86 = arith.addf %80, %85 : vector<16x4xf32>
    %87 = vector.extract_strided_slice %69 {offsets = [0, 3], sizes = [16, 1], strides = [1, 1]} : vector<16x6xf32> to vector<16x1xf32>
    %88 = vector.extract_strided_slice %60 {offsets = [0, 0], sizes = [1, 4], strides = [1, 1]} : vector<2x4xf32> to vector<1x4xf32>
    %89 = vector.broadcast %87 : vector<16x1xf32> to vector<16x4xf32>
    %90 = vector.broadcast %88 : vector<1x4xf32> to vector<16x4xf32>
    %91 = arith.mulf %89, %90 : vector<16x4xf32>
    %92 = arith.addf %86, %91 : vector<16x4xf32>
    %93 = vector.extract_strided_slice %69 {offsets = [0, 4], sizes = [16, 1], strides = [1, 1]} : vector<16x6xf32> to vector<16x1xf32>
    %94 = vector.extract_strided_slice %64 {offsets = [0, 0], sizes = [1, 4], strides = [1, 1]} : vector<2x4xf32> to vector<1x4xf32>
    %95 = vector.broadcast %93 : vector<16x1xf32> to vector<16x4xf32>
    %96 = vector.broadcast %94 : vector<1x4xf32> to vector<16x4xf32>
    %97 = arith.mulf %95, %96 : vector<16x4xf32>
    %98 = arith.addf %92, %97 : vector<16x4xf32>
    %99 = vector.extract_strided_slice %69 {offsets = [0, 5], sizes = [16, 1], strides = [1, 1]} : vector<16x6xf32> to vector<16x1xf32>
    %100 = vector.extract_strided_slice %68 {offsets = [0, 0], sizes = [1, 4], strides = [1, 1]} : vector<2x4xf32> to vector<1x4xf32>
    %101 = vector.broadcast %99 : vector<16x1xf32> to vector<16x4xf32>
    %102 = vector.broadcast %100 : vector<1x4xf32> to vector<16x4xf32>
    %103 = arith.mulf %101, %102 : vector<16x4xf32>
    %104 = arith.addf %98, %103 : vector<16x4xf32>
    %c0_51 = arith.constant 0 : index
    %c0_52 = arith.constant 0 : index
    %105 = vector.load %arg9[%c0_51, %c0_52] : memref<32x4xf32, #tpu.memory_space<vmem>>, vector<16x4xf32>
    tpu.vector_store %arg9[%c0_51, %c0_52], %104 {strides = array<i32>} : memref<32x4xf32, #tpu.memory_space<vmem>>, vector<16x4xf32>,
    %106 = vector.extract_strided_slice %35 {offsets = [16, 0], sizes = [16, 6], strides = [1, 1]} : vector<32x6xf32> to vector<16x6xf32>
    %107 = vector.extract_strided_slice %106 {offsets = [0, 0], sizes = [16, 1], strides = [1, 1]} : vector<16x6xf32> to vector<16x1xf32>
    %108 = vector.extract_strided_slice %48 {offsets = [1, 0], sizes = [1, 4], strides = [1, 1]} : vector<2x4xf32> to vector<1x4xf32>
    %109 = vector.broadcast %107 : vector<16x1xf32> to vector<16x4xf32>
    %110 = vector.broadcast %108 : vector<1x4xf32> to vector<16x4xf32>
    %111 = arith.mulf %109, %110 : vector<16x4xf32>
    %112 = vector.extract_strided_slice %106 {offsets = [0, 1], sizes = [16, 1], strides = [1, 1]} : vector<16x6xf32> to vector<16x1xf32>
    %113 = vector.extract_strided_slice %52 {offsets = [1, 0], sizes = [1, 4], strides = [1, 1]} : vector<2x4xf32> to vector<1x4xf32>
    %114 = vector.broadcast %112 : vector<16x1xf32> to vector<16x4xf32>
    %115 = vector.broadcast %113 : vector<1x4xf32> to vector<16x4xf32>
    %116 = arith.mulf %114, %115 : vector<16x4xf32>
    %117 = arith.addf %111, %116 : vector<16x4xf32>
    %118 = vector.extract_strided_slice %106 {offsets = [0, 2], sizes = [16, 1], strides = [1, 1]} : vector<16x6xf32> to vector<16x1xf32>
    %119 = vector.extract_strided_slice %56 {offsets = [1, 0], sizes = [1, 4], strides = [1, 1]} : vector<2x4xf32> to vector<1x4xf32>
    %120 = vector.broadcast %118 : vector<16x1xf32> to vector<16x4xf32>
    %121 = vector.broadcast %119 : vector<1x4xf32> to vector<16x4xf32>
    %122 = arith.mulf %120, %121 : vector<16x4xf32>
    %123 = arith.addf %117, %122 : vector<16x4xf32>
    %124 = vector.extract_strided_slice %106 {offsets = [0, 3], sizes = [16, 1], strides = [1, 1]} : vector<16x6xf32> to vector<16x1xf32>
    %125 = vector.extract_strided_slice %60 {offsets = [1, 0], sizes = [1, 4], strides = [1, 1]} : vector<2x4xf32> to vector<1x4xf32>
    %126 = vector.broadcast %124 : vector<16x1xf32> to vector<16x4xf32>
    %127 = vector.broadcast %125 : vector<1x4xf32> to vector<16x4xf32>
    %128 = arith.mulf %126, %127 : vector<16x4xf32>
    %129 = arith.addf %123, %128 : vector<16x4xf32>
    %130 = vector.extract_strided_slice %106 {offsets = [0, 4], sizes = [16, 1], strides = [1, 1]} : vector<16x6xf32> to vector<16x1xf32>
    %131 = vector.extract_strided_slice %64 {offsets = [1, 0], sizes = [1, 4], strides = [1, 1]} : vector<2x4xf32> to vector<1x4xf32>
    %132 = vector.broadcast %130 : vector<16x1xf32> to vector<16x4xf32>
    %133 = vector.broadcast %131 : vector<1x4xf32> to vector<16x4xf32>
    %134 = arith.mulf %132, %133 : vector<16x4xf32>
    %135 = arith.addf %129, %134 : vector<16x4xf32>
    %136 = vector.extract_strided_slice %106 {offsets = [0, 5], sizes = [16, 1], strides = [1, 1]} : vector<16x6xf32> to vector<16x1xf32>
    %137 = vector.extract_strided_slice %68 {offsets = [1, 0], sizes = [1, 4], strides = [1, 1]} : vector<2x4xf32> to vector<1x4xf32>
    %138 = vector.broadcast %136 : vector<16x1xf32> to vector<16x4xf32>
    %139 = vector.broadcast %137 : vector<1x4xf32> to vector<16x4xf32>
    %140 = arith.mulf %138, %139 : vector<16x4xf32>
    %141 = arith.addf %135, %140 : vector<16x4xf32>
    %c16 = arith.constant 16 : index
    %c0_53 = arith.constant 0 : index
    %142 = vector.load %arg9[%c16, %c0_53] : memref<32x4xf32, #tpu.memory_space<vmem>>, vector<16x4xf32>
    tpu.vector_store %arg9[%c16, %c0_53], %141 {strides = array<i32>} : memref<32x4xf32, #tpu.memory_space<vmem>>, vector<16x4xf32>,
    return
  }
}

</mosaic_0001>

<bundles_post_ra>
// kernel: deeponet_forward.1
= control target key start
LH: loop header
LB: loop body
LE: loop exit
PB: predicated region body
PF: predicated region fallthrough
CT: control target
= control target key end

     0   :  { %v2322_v0 = vmov 0   ;;  %vm674_vm0 = vcmask 261120   ;;  %vm2324_vm1 = vmmov 0   ;;  %vm1538_vm2 = vcmask 31744   ;;  %s2863_s0 = inlined_call_operand.vmem [shape: f32[32,1], index: 0, kind: input, shape index: {}]   ;;  %s2864_s3 = inlined_call_operand.vmem [shape: bf16[3,128,128], index: 3, kind: input, shape index: {}]   ;;  %s2865_s2 = inlined_call_operand.vmem [shape: f32[2,128], index: 2, kind: input, shape index: {}]   ;;  %s2866_s4 = inlined_call_operand.vmem [shape: f32[3,128], index: 4, kind: input, shape index: {}]   ;;  %s2867_s6 = inlined_call_operand.vmem [shape: bf16[32,768], index: 6, kind: input, shape index: {}]   ;;  %s2868_s5 = inlined_call_operand.vmem [shape: bf16[128,6], index: 5, kind: input, shape index: {}]   ;;  %s2869_s1 = inlined_call_operand.vmem [shape: f32[2,32], index: 1, kind: input, shape index: {}]   ;;  %s2870_s8 = inlined_call_operand.vmem [shape: bf16[6,128,4], index: 8, kind: input, shape index: {}]   ;;  %s2871_s7 = inlined_call_operand.vmem [shape: f32[1,768], index: 7, kind: input, shape index: {}]   ;;  %s2872_s9 = inlined_call_operand.vmem [shape: f32[32,4], index: 9, kind: output, shape index: {}]  }
   0x1   :  { %2158 = vset.pattern.permute.xlu1 %v2322_v0  ;;  %2157 = vset.pattern.permute.xlu0 %v2322_v0  ;;  %v35_v1 = vld [vmem:[%s2863_s0 + $0x10] sm:$0xff]  ;;  %v33_v2 = vld [vmem:[%s2863_s0] sm:$0xff]  ;;  %v36_v3 = vld [vmem:[%s2863_s0 + $0x18] sm:$0xff] }
   0x2   :  { %50 = vperm.xlu1 %2158, %v35_v1   ;;  %40 = vperm.xlu0 %2157, %v33_v2   ;;  %v34_v4 = vld [vmem:[%s2863_s0 + $0x8] sm:$0xff]  ;;  %v2180_v5 = vld [vmem:[%s2864_s3 + $0x38] sm:$0xff]   ;;  %v2181_v6 = vld [vmem:[%s2864_s3 + $0x30] sm:$0xff]  }
   0x3   :  { %1949 = vmatprep.subr.bf16.mxu0 %v2180_v5  ;;  %v2182_v7 = vld [vmem:[%s2864_s3 + $0x28] sm:$0xff]   ;;  %v2183_v8 = vld [vmem:[%s2864_s3 + $0x20] sm:$0xff]   ;;  %v2184_v9 = vld [vmem:[%s2864_s3 + $0x18] sm:$0xff]  }
   0x4   :  { %1950 = vmatpush3.bf16.msra.mxu0 %v2180_v5  ;;  %v2185_v10 = vld [vmem:[%s2864_s3 + $0x10] sm:$0xff]   ;;  %v2186_v11 = vld [vmem:[%s2864_s3 + $0x8] sm:$0xff]   ;;  %v2188_v12 = vld [vmem:[%s2864_s3 + $0x78] sm:$0xff]  }
   0x5   :  { %1951 = vmatprep.subr.bf16.mxu0 %v2181_v6  ;;  %v2189_v13 = vld [vmem:[%s2864_s3 + $0x70] sm:$0xff]   ;;  %1969 = vmatprep.subr.bf16.mxu1 %v2188_v12  ;;  %v2187_v14 = vld [vmem:[%s2864_s3] sm:$0xff]   ;;  %v2190_v35 = vld [vmem:[%s2864_s3 + $0x68] sm:$0xff]  }
   0x6   :  { %55 = vperm.xlu1 %2158, %v36_v3   ;;  %45 = vperm.xlu0 %2157, %v34_v4   ;;  %v1643_v15 = vld [vmem:[%s2865_s2] ss:$0 sm:$0xff]  ;;  %v1644_v16 = vld [vmem:[%s2865_s2 + $0x1] ss:$0 sm:$0xff]  ;;  %v2192_v37 = vld [vmem:[%s2864_s3 + $0x58] sm:$0xff]  }
   0x7   :  { %1970 = vmatpush3.bf16.msra.mxu1 %v2188_v12  ;;  %v2191_v36 = vld [vmem:[%s2864_s3 + $0x60] sm:$0xff]   ;;  %v2193_v38 = vld [vmem:[%s2864_s3 + $0x50] sm:$0xff]   ;;  %v2194_v39 = vld [vmem:[%s2864_s3 + $0x48] sm:$0xff]  }
   0x8   :  { %1952 = vmatpush3.bf16.msra.mxu0 %v2181_v6  ;;  %1971 = vmatprep.subr.bf16.mxu1 %v2189_v13  ;;  %v2195_v40 = vld [vmem:[%s2864_s3 + $0x40] sm:$0xff]   ;;  %v2196_v41 = vld [vmem:[%s2864_s3 + $0xb8] sm:$0xff]   ;;  %v2197_v42 = vld [vmem:[%s2864_s3 + $0xb0] sm:$0xff]  }
   0x9   :  { %1953 = vmatprep.subr.bf16.mxu0 %v2182_v7  ;;  %v1645_v44 = vld [vmem:[%s2866_s4] ss:$0 sm:$0xff]  ;;  %v2198_v58 = vld [vmem:[%s2864_s3 + $0xa8] sm:$0xff]   ;;  %v2200_v60 = vld [vmem:[%s2864_s3 + $0x98] sm:$0xff]  }
   0xa   :  { %v2199_v59 = vld [vmem:[%s2864_s3 + $0xa0] sm:$0xff]   ;;  %v2201_v61 = vld [vmem:[%s2864_s3 + $0x90] sm:$0xff]   ;;  %v2202_v62 = vld [vmem:[%s2864_s3 + $0x88] sm:$0xff]  }
   0xb   :  { %1972 = vmatpush3.bf16.msra.mxu1 %v2189_v13  ;;  %v2203_v63 = vld [vmem:[%s2864_s3 + $0x80] sm:$0xff]   ;;  %v2206_v1 = vld [vmem:[%s2867_s6 + $0x34] ss:$24 sps:$4 sm:$0xff]   ;;  %v2210_v2 = vld [vmem:[%s2868_s5 + $0x38] sm:$0xff]  }
   0xc   :  { %1954 = vmatpush3.bf16.msra.mxu0 %v2182_v7  ;;  %1973 = vmatprep.subr.bf16.mxu1 %v2190_v35  ;;  %v2211_v3 = vld [vmem:[%s2868_s5 + $0x30] sm:$0xff]   ;;  %v1670_v5 = vld [vmem:[%s2866_s4 + $0x1] ss:$0 sm:$0xff] }
   0xd   :  { %1955 = vmatprep.subr.bf16.mxu0 %v2183_v8 }
   0xf   :  { %1974 = vmatpush3.bf16.msra.mxu1 %v2190_v35  ;;  %v2231_v35 = vld [vmem:[%s2870_s8 + $0x78] sm:$0xff]  }
  0x10   :  { %1956 = vmatpush3.bf16.msra.mxu0 %v2183_v8  ;;  %1975 = vmatprep.subr.bf16.mxu1 %v2191_v36 }
  0x11   :  { %1957 = vmatprep.subr.bf16.mxu0 %v2184_v9 }
  0x13   :  { %1976 = vmatpush3.bf16.msra.mxu1 %v2191_v36  ;;  %v2323_v36 = vmov 0.0  }
  0x14   :  { %1958 = vmatpush3.bf16.msra.mxu0 %v2184_v9  ;;  %1977 = vmatprep.subr.bf16.mxu1 %v2192_v37 }
  0x15   :  { %1959 = vmatprep.subr.bf16.mxu0 %v2185_v10 }
  0x17   :  { %1978 = vmatpush3.bf16.msra.mxu1 %v2192_v37  ;;  %v2233_v37 = vld [vmem:[%s2870_s8 + $0x70] sm:$0xff]  }
  0x18   :  { %1960 = vmatpush3.bf16.msra.mxu0 %v2185_v10  ;;  %1979 = vmatprep.subr.bf16.mxu1 %v2193_v38 }
  0x19   :  { %1961 = vmatprep.subr.bf16.mxu0 %v2186_v11 }
  0x1b   :  { %1980 = vmatpush3.bf16.msra.mxu1 %v2193_v38  ;;  %v2235_v38 = vld [vmem:[%s2870_s8 + $0x68] sm:$0xff]  }
  0x1c   :  { %1962 = vmatpush3.bf16.msra.mxu0 %v2186_v11  ;;  %1981 = vmatprep.subr.bf16.mxu1 %v2194_v39 }
  0x1d   :  { %1963 = vmatprep.subr.bf16.mxu0 %v2187_v14 }
  0x1f   :  { %1982 = vmatpush3.bf16.msra.mxu1 %v2194_v39  ;;  %v2237_v39 = vld [vmem:[%s2870_s8 + $0x60] sm:$0xff]  }
  0x20   :  { %1964 = vmatpush3.bf16.msra.mxu0 %v2187_v14  ;;  %1983 = vmatprep.subr.bf16.mxu1 %v2195_v40 }
  0x21   :  { %1989 = vmatprep.subr.bf16.mxu0 %v2196_v41 }
  0x23   :  { %1984 = vmatpush3.bf16.msra.mxu1 %v2195_v40  ;;  %v2239_v40 = vld [vmem:[%s2870_s8 + $0x58] sm:$0xff]  }
  0x24   :  { %2009 = vmatprep.subr.bf16.mxu1 %v2210_v2 }
  0x7d   :  { %v51_v17 = vpop.permute.xlu1 %50  ;;  %v41_v18 = vpop.permute.xlu0 %40 }
  0x7e   :  { %v64_v19 = vmul.f32 %v1643_v15, %v51_v17  ;;  %v62_v20 = vmul.f32 %v1643_v15, %v41_v18  ;;  %v2204_v18 = vld [vmem:[%s2867_s6 + $0x30] ss:$24 sps:$4 sm:$0xff]  }
  0x80   :  { %v73_v21 = vadd.f32 %v1644_v16, %v64_v19  ;;  %v71_v22 = vadd.f32 %v1644_v16, %v62_v20  ;;  %v2209_v20 = vld [vmem:[%s2867_s6 + $0x4] ss:$24 sps:$4 sm:$0xff]  }
  0x81   :  { %v56_v23 = vpop.permute.xlu1 %55  ;;  %v46_v24 = vpop.permute.xlu0 %45 }
  0x82   :  { %v65_v25 = vmul.f32 %v1643_v15, %v56_v23  ;;  %v63_v26 = vmul.f32 %v1643_v15, %v46_v24  ;;  %2278 = vtanh.f32 %v73_v21  ;;  %v2207_v21 = vld [vmem:[%s2867_s6] ss:$24 sps:$4 sm:$0xff]   ;;  %v2212_v24 = vld [vmem:[%s2868_s5 + $0x28] sm:$0xff]  }
  0x83   :  { %2280 = vtanh.f32 %v71_v22  ;;  %v568_v22 = vld [vmem:[%s2869_s1] sm:$0x3] }
  0x84   :  { %v74_v27 = vadd.f32 %v1644_v16, %v65_v25  ;;  %v72_v28 = vadd.f32 %v1644_v16, %v63_v26  ;;  %v2500_v23 = vpack.c.bf16 %v568_v22, %v568_v22  ;;  %v2213_v25 = vld [vmem:[%s2868_s5 + $0x20] sm:$0xff]   ;;  %v2214_v26 = vld [vmem:[%s2868_s5 + $0x18] sm:$0xff]   ;;  %v2242_v22 = vld [vmem:[%s2870_s8 + $0x8] sm:$0xff]  }
  0x86   :  { %2282 = vtanh.f32 %v74_v27  ;;  %v2215_v27 = vld [vmem:[%s2868_s5 + $0x10] sm:$0xff]  }
  0x87   :  { %2284 = vtanh.f32 %v72_v28  ;;  %v2216_v28 = vld [vmem:[%s2868_s5 + $0x8] sm:$0xff]  }
  0x8f   :  { %v2279_v29 = vpop.eup %2278 }
  0x90   :  { %v2281_v30 = vpop.eup %2280 }
  0x93   :  { %v2283_v31 = vpop.eup %2282 }
  0x94   :  { %v2285_v32 = vpop.eup %2284  ;;  %v80_v33 = vpack.c.bf16 %v2283_v31, %v2279_v29  ;;  %v2217_v29 = vld [vmem:[%s2868_s5] sm:$0xff]  }
  0x95   :  { %v79_v34 = vpack.c.bf16 %v2285_v32, %v2281_v30  ;;  %v2220_v30 = vld [vmem:[%s2867_s6 + $0x3c] ss:$24 sps:$4 sm:$0xff]   ;;  %v2224_v31 = vld [vmem:[%s2867_s6 + $0x40] ss:$24 sps:$4 sm:$0xff]  }
  0x96   :  { %v2226_v32 = vld [vmem:[%s2867_s6 + $0x44] ss:$24 sps:$4 sm:$0xff]  }
  0x97   :  { %1965 = vmatprep.mubr.bf16.mxu0 %v79_v34  ;;  %v2227_v34 = vld [vmem:[%s2867_s6 + $0x10] ss:$24 sps:$4 sm:$0xff]  }
  0x98   :  { %1966 = vmatmul.mubr.bf16.vlgmr.msra.gmra.mxu0 %v80_v33  ;;  %v2229_v33 = vld [vmem:[%s2867_s6 + $0x14] ss:$24 sps:$4 sm:$0xff]  }
  0x99   :  { %1990 = vmatpush3.bf16.msra.mxu0 %v2196_v41  ;;  %v2241_v41 = vld [vmem:[%s2870_s8 + $0x50] sm:$0xff]  }
  0x9a   :  { %1991 = vmatprep.subr.bf16.mxu0 %v2197_v42 }
  0x9d   :  { %1992 = vmatpush3.bf16.msra.mxu0 %v2197_v42  ;;  %v2243_v42 = vld [vmem:[%s2870_s8 + $0x48] sm:$0xff]  }
  0x9e   :  { %1993 = vmatprep.subr.bf16.mxu0 %v2198_v58 }
  0xa1   :  { %1994 = vmatpush3.bf16.msra.mxu0 %v2198_v58 }
  0xa2   :  { %1995 = vmatprep.subr.bf16.mxu0 %v2199_v59 }
  0xa5   :  { %1996 = vmatpush3.bf16.msra.mxu0 %v2199_v59 }
  0xa6   :  { %1997 = vmatprep.subr.bf16.mxu0 %v2200_v60 }
  0xa9   :  { %1998 = vmatpush3.bf16.msra.mxu0 %v2200_v60 }
  0xaa   :  { %1999 = vmatprep.subr.bf16.mxu0 %v2201_v61 }
  0xad   :  { %2000 = vmatpush3.bf16.msra.mxu0 %v2201_v61 }
  0xae   :  { %2001 = vmatprep.subr.bf16.mxu0 %v2202_v62 }
  0xb1   :  { %2002 = vmatpush3.bf16.msra.mxu0 %v2202_v62 }
  0xb2   :  { %2003 = vmatprep.subr.bf16.mxu0 %v2203_v63 }
  0xb5   :  { %2004 = vmatpush3.bf16.msra.mxu0 %v2203_v63 }
  0xb6   :  { %690 = vmatprep.subr.bf16.mxu0 %v2206_v1 }
 0x158   :  { %v1967_v43 = vpop.f32.mrf.mxu0 }
 0x159   :  { %v193_v49 = vadd.f32 %v1967_v43, %v1645_v44  ;;  %v2245_v43 = vld [vmem:[%s2870_s8 + $0x40] sm:$0xff]  }
 0x15a   :  { %v184_v45 = vpop.f32.mrf.mxu0 }
 0x15b   :  { %v185_v46 = vadd.f32 %v1645_v44, %v184_v45  ;;  %v584_v45 = vlaneseq }
 0x15c   :  { %v1968_v47 = vpop.f32.mrf.mxu0 }
 0x15d   :  { %v196_v48 = vadd.f32 %v1968_v47, %v1645_v44  ;;  %2286 = vtanh.f32 %v185_v46  ;;  %v2576_v46 = vshrl.u32 %v584_v45, 7 }
 0x15e   :  { %v187_v50 = vpop.f32.mrf.mxu0 }
 0x15f   :  { %v188_v51 = vadd.f32 %v1645_v44, %v187_v50  ;;  %2288 = vtanh.f32 %v196_v48  ;;  %v2325_v44 = vmov 1   ;;  %v1695_v48 = vld [vmem:[%s2866_s4 + $0x2] ss:$0 sm:$0xff] }
 0x160   :  { %2159 = vset.pattern.permute.xlu0 %v2325_v44 }
 0x161   :  { %2290 = vtanh.f32 %v188_v51  ;;  %v2582_v51 = vsub.s32 1, %v2576_v46 }
 0x162   :  { %2292 = vtanh.f32 %v193_v49 }
 0x16a   :  { %v2287_v52 = vpop.eup %2286 }
 0x16c   :  { %v2289_v53 = vpop.eup %2288 }
 0x16e   :  { %v2291_v54 = vpop.eup %2290 }
 0x16f   :  { %v2293_v55 = vpop.eup %2292  ;;  %v203_v56 = vpack.c.bf16 %v2291_v54, %v2287_v52 }
 0x170   :  { %v204_v57 = vpack.c.bf16 %v2289_v53, %v2293_v55  ;;  %v2587_v53 = vld [vmem:[%s2871_s7] sm:$0x3f] }
 0x171   :  { %1985 = vmatprep.mubr.bf16.mxu1 %v203_v56  ;;  %v591_v58 = vrot.slane %v2587_v53, %v2582_v51 }
 0x172   :  { %1986 = vmatmul.mubr.bf16.vlgmr.msra.gmra.mxu1 %v204_v57 }
 0x173   :  { %2010 = vmatpush3.bf16.msra.mxu1 %v2210_v2 }
 0x174   :  { %2011 = vmatprep.subr.bf16.mxu1 %v2211_v3 }
 0x177   :  { %2012 = vmatpush3.bf16.msra.mxu1 %v2211_v3 }
 0x178   :  { %2013 = vmatprep.subr.bf16.mxu1 %v2212_v24 }
 0x17b   :  { %2014 = vmatpush3.bf16.msra.mxu1 %v2212_v24  ;;  %v2244_v24 = vld [vmem:[%s2870_s8] sm:$0xff]  }
 0x17c   :  { %2015 = vmatprep.subr.bf16.mxu1 %v2213_v25 }
 0x17f   :  { %2016 = vmatpush3.bf16.msra.mxu1 %v2213_v25 }
 0x180   :  { %2017 = vmatprep.subr.bf16.mxu1 %v2214_v26 }
 0x183   :  { %2018 = vmatpush3.bf16.msra.mxu1 %v2214_v26  ;;  %v2246_v26 = vld [vmem:[%s2870_s8 + $0xb8] sm:$0xff]  }
 0x184   :  { %2019 = vmatprep.subr.bf16.mxu1 %v2215_v27 }
 0x187   :  { %2020 = vmatpush3.bf16.msra.mxu1 %v2215_v27  ;;  %v2248_v27 = vld [vmem:[%s2870_s8 + $0xb0] sm:$0xff]  }
 0x188   :  { %2021 = vmatprep.subr.bf16.mxu1 %v2216_v28 }
 0x18b   :  { %2022 = vmatpush3.bf16.msra.mxu1 %v2216_v28  ;;  %v2249_v28 = vld [vmem:[%s2870_s8 + $0xf0] sm:$0xff]  }
 0x18c   :  { %2023 = vmatprep.subr.bf16.mxu1 %v2217_v29 }
 0x18f   :  { %2024 = vmatpush3.bf16.msra.mxu1 %v2217_v29  ;;  %v2250_v29 = vld [vmem:[%s2870_s8 + $0xa8] sm:$0xff]  }
 0x190   :  { %731 = vmatprep.subr.bf16.mxu1 %v2220_v30  ;;  %v2251_v30 = vld [vmem:[%s2870_s8 + $0xe8] sm:$0xff]  }
 0x232   :  { %v1987_v4 = vpop.f32.mrf.mxu1 }
 0x233   :  { %v318_v10 = vadd.f32 %v1987_v4, %v1670_v5 }
 0x234   :  { %v309_v6 = vpop.f32.mrf.mxu1 }
 0x235   :  { %v310_v7 = vadd.f32 %v1670_v5, %v309_v6  ;;  %v2218_v6 = vld [vmem:[%s2867_s6 + $0x38] ss:$24 sps:$4 sm:$0xff]  }
 0x236   :  { %v1988_v8 = vpop.f32.mrf.mxu1 }
 0x237   :  { %v321_v9 = vadd.f32 %v1988_v8, %v1670_v5  ;;  %2294 = vtanh.f32 %v310_v7  ;;  %v2223_v8 = vld [vmem:[%s2867_s6 + $0xc] ss:$24 sps:$4 sm:$0xff]  }
 0x238   :  { %v312_v11 = vpop.f32.mrf.mxu1 }
 0x239   :  { %v313_v12 = vadd.f32 %v1670_v5, %v312_v11  ;;  %2296 = vtanh.f32 %v321_v9  ;;  %v2221_v11 = vld [vmem:[%s2867_s6 + $0x8] ss:$24 sps:$4 sm:$0xff]  }
 0x23b   :  { %2298 = vtanh.f32 %v313_v12 }
 0x23c   :  { %2300 = vtanh.f32 %v318_v10  ;;  %v2247_v10 = vld [vmem:[%s2870_s8 + $0xf8] sm:$0xff]  }
 0x244   :  { %v2295_v13 = vpop.eup %2294 }
 0x246   :  { %v2297_v14 = vpop.eup %2296 }
 0x248   :  { %v2299_v15 = vpop.eup %2298 }
 0x249   :  { %v2301_v16 = vpop.eup %2300  ;;  %v328_v17 = vpack.c.bf16 %v2299_v15, %v2295_v13  ;;  %v2230_v13 = vld [vmem:[%s2870_s8 + $0x38] sm:$0xff]   ;;  %v2232_v15 = vld [vmem:[%s2870_s8 + $0x30] sm:$0xff]  }
 0x24a   :  { %v329_v19 = vpack.c.bf16 %v2297_v14, %v2301_v16  ;;  %v2614_v14 = vsub.s32 0, %v2576_v46 }
 0x24b   :  { %2005 = vmatprep.mubr.bf16.mxu0 %v328_v17  ;;  %v2234_v17 = vld [vmem:[%s2870_s8 + $0x28] sm:$0xff]  }
 0x24c   :  { %2006 = vmatmul.mubr.bf16.vlgmr.msra.gmra.mxu0 %v329_v19  ;;  %v587_v16 = vrot.slane %v2587_v53, %v2614_v14  ;;  %v2236_v19 = vld [vmem:[%s2870_s8 + $0x20] sm:$0xff]  }
 0x24d   :  { %691 = vmatpush1.bf16.msra.mxu0 %v2204_v18  ;;  %710 = vmatprep.mubr.bf16.mxu0 %v2322_v0 }
 0x24e   :  { %692 = vmatprep.subr.bf16.mxu0 %v2209_v20  ;;  %v2238_v20 = vld [vmem:[%s2870_s8 + $0x18] sm:$0xff]  }
 0x251   :  { %693 = vmatpush1.bf16.msra.mxu0 %v2207_v21  ;;  %v2240_v21 = vld [vmem:[%s2870_s8 + $0x10] sm:$0xff]  }
 0x252   :  { %772 = vmatprep.subr.bf16.mxu0 %v2226_v32  ;;  %v2253_v32 = vld [vmem:[%s2870_s8 + $0xe0] sm:$0xff]  }
 0x254   :  { %1724 = vmatmul.mubr.msk.bf16.vlgmr.msra.gmra.mxu0 %vm674_vm0, %v2500_v23 }
 0x255   :  { %792 = vmatprep.mubr.bf16.mxu0 %v2322_v0  ;;  %773 = vmatpush1.bf16.msra.mxu0 %v2224_v31  ;;  %v2252_v31 = vld [vmem:[%s2870_s8 + $0xa0] sm:$0xff]  }
 0x256   :  { %774 = vmatprep.subr.bf16.mxu0 %v2229_v33  ;;  %v2254_v33 = vld [vmem:[%s2870_s8 + $0x98] sm:$0xff]  }
 0x259   :  { %775 = vmatpush1.bf16.msra.mxu0 %v2227_v34  ;;  %v2255_v34 = vld [vmem:[%s2870_s8 + $0xd8] sm:$0xff]  }
 0x25a   :  { %2049 = vmatprep.subr.bf16.mxu0 %v2323_v36 }
 0x25c   :  { %1726 = vmatmul.mubr.msk.bf16.vlgmr.msra.gmra.mxu0 %vm674_vm0, %v2500_v23 }
 0x25d   :  { %2050 = vmatpush3.bf16.msra.mxu0 %v2231_v35  ;;  %2065 = vmatprep.mubr.msk.bf16.mxu0 %vm2324_vm1, %v2323_v36  ;;  %v2256_v35 = vld [vmem:[%s2870_s8 + $0x90] sm:$0xff]  }
 0x25e   :  { %2051 = vmatprep.subr.bf16.mxu0 %v2323_v36 }
 0x261   :  { %2052 = vmatpush3.bf16.msra.mxu0 %v2233_v37  ;;  %v2257_v37 = vld [vmem:[%s2870_s8 + $0xd0] sm:$0xff]  }
 0x262   :  { %2053 = vmatprep.subr.bf16.mxu0 %v2323_v36 }
 0x265   :  { %2054 = vmatpush3.bf16.msra.mxu0 %v2235_v38  ;;  %v2258_v38 = vld [vmem:[%s2870_s8 + $0x88] sm:$0xff]  }
 0x266   :  { %2055 = vmatprep.subr.bf16.mxu0 %v2323_v36 }
 0x269   :  { %2056 = vmatpush3.bf16.msra.mxu0 %v2237_v39  ;;  %v2259_v39 = vld [vmem:[%s2870_s8 + $0xc8] sm:$0xff]  }
 0x26a   :  { %2057 = vmatprep.subr.bf16.mxu0 %v2323_v36 }
 0x26d   :  { %2058 = vmatpush3.bf16.msra.mxu0 %v2239_v40  ;;  %v2260_v40 = vld [vmem:[%s2870_s8 + $0x80] sm:$0xff]  }
 0x26e   :  { %2059 = vmatprep.subr.bf16.mxu0 %v2323_v36 }
 0x271   :  { %2060 = vmatpush3.bf16.msra.mxu0 %v2241_v41  ;;  %v2261_v41 = vld [vmem:[%s2870_s8 + $0xc0] sm:$0xff]  }
 0x272   :  { %2061 = vmatprep.subr.bf16.mxu0 %v2323_v36 }
 0x275   :  { %2062 = vmatpush3.bf16.msra.mxu0 %v2243_v42 }
 0x276   :  { %2063 = vmatprep.subr.bf16.mxu0 %v2323_v36 }
 0x279   :  { %2064 = vmatpush3.bf16.msra.mxu0 %v2245_v43 }
 0x27a   :  { %2089 = vmatprep.subr.bf16.mxu0 %v2323_v36 }
 0x30c   :  { %v2007_v47 = vpop.f32.mrf.mxu0 }
 0x30d   :  { %v443_v55 = vadd.f32 %v2007_v47, %v1695_v48 }
 0x30e   :  { %v434_v49 = vpop.f32.mrf.mxu0 }
 0x30f   :  { %v435_v50 = vadd.f32 %v1695_v48, %v434_v49  ;;  %v594_v49 = vsub.s32 2, %v2576_v46 }
 0x310   :  { %v2008_v52 = vpop.f32.mrf.mxu0 }
 0x311   :  { %v446_v54 = vadd.f32 %v2008_v52, %v1695_v48  ;;  %2302 = vtanh.f32 %v435_v50  ;;  %v598_v52 = vsub.s32 3, %v2576_v46 }
 0x312   :  { %v437_v56 = vpop.f32.mrf.mxu0 }
 0x313   :  { %v438_v57 = vadd.f32 %v1695_v48, %v437_v56  ;;  %2304 = vtanh.f32 %v446_v54  ;;  %v2326_v56 = vmov 3  }
 0x314   :  { %v712_v59 = vpop.f32.mrf.mxu0 }
 0x315   :  { %2306 = vtanh.f32 %v438_v57  ;;  %v713_v18 = vadd.f32 %v712_v59, %v587_v16  ;;  %v2327_v57 = vmov 2   ;;  %v602_v16 = vsub.s32 4, %v2576_v46 }
 0x316   :  { %2308 = vtanh.f32 %v443_v55  ;;  %v714_v60 = vpop.f32.mrf.mxu0 }
 0x317   :  { %v715_v61 = vadd.f32 %v714_v60, %v591_v58  ;;  %v595_v58 = vrot.slane %v2587_v53, %v594_v49 }
 0x318   :  { %v716_v62 = vpop.f32.mrf.mxu0 }
 0x319   :  { %2310 = vtanh.f32 %v715_v61  ;;  %v599_v61 = vrot.slane %v2587_v53, %v598_v52 }
 0x31a   :  { %v717_v63 = vpop.f32.mrf.mxu0  ;;  %2312 = vtanh.f32 %v713_v18  ;;  %v2265_v18 = vld [vmem:[%s2870_s8 + $0x170] sm:$0xff]  }
 0x31c   :  { %v2711_v42 = vpop.f32.mrf.mxu0 }
 0x31e   :  { %v2303_v1 = vpop.eup %2302  ;;  %v2713_v43 = vpop.f32.mrf.mxu0 }
 0x320   :  { %v2305_v2 = vpop.eup %2304  ;;  %v798_v45 = vpop.f32.mrf.mxu0 }
 0x322   :  { %v2307_v3 = vpop.eup %2306  ;;  %v799_v47 = vpop.f32.mrf.mxu0 }
 0x323   :  { %v2309_v4 = vpop.eup %2308  ;;  %v453_v5 = vpack.c.bf16 %v2307_v3, %v2303_v1  ;;  %v2328_v3 = vmov 4  }
 0x324   :  { %v454_v7 = vpack.c.bf16 %v2305_v2, %v2309_v4 }
 0x325   :  { %2025 = vmatprep.mubr.bf16.mxu1 %v453_v5 }
 0x326   :  { %v2311_v9 = vpop.eup %2310  ;;  %2026 = vmatmul.mubr.bf16.vlgmr.msra.gmra.mxu1 %v454_v7 }
 0x327   :  { %732 = vmatpush1.bf16.msra.mxu1 %v2218_v6  ;;  %751 = vmatprep.mubr.bf16.mxu1 %v2322_v0  ;;  %v808_v12 = vpack.c.bf16 %v2311_v9, %v2311_v9 }
 0x328   :  { %733 = vmatprep.subr.bf16.mxu1 %v2223_v8  ;;  %v2329_v8 = vmov 5  }
 0x329   :  { %2066 = vmatmul.mubr.bf16.vlgmr.msra.gmra.mxu0 %v808_v12 }
 0x32a   :  { %2090 = vmatpush3.bf16.msra.mxu0 %v2247_v10  ;;  %2105 = vmatprep.mubr.msk.bf16.mxu0 %vm2324_vm1, %v2323_v36  ;;  %v2262_v10 = vld [vmem:[%s2870_s8 + $0x138] sm:$0xff]  }
 0x32b   :  { %734 = vmatpush1.bf16.msra.mxu1 %v2221_v11  ;;  %2091 = vmatprep.subr.bf16.mxu0 %v2323_v36 }
 0x32c   :  { %2029 = vmatprep.subr.bf16.mxu1 %v2323_v36 }
 0x32e   :  { %1725 = vmatmul.mubr.msk.bf16.vlgmr.msra.gmra.mxu1 %vm674_vm0, %v2500_v23  ;;  %v2313_v23 = vpop.eup %2312  ;;  %2092 = vmatpush3.bf16.msra.mxu0 %v2249_v28  ;;  %v2271_v28 = vld [vmem:[%s2870_s8 + $0x158] sm:$0xff]  }
 0x32f   :  { %2030 = vmatpush3.bf16.msra.mxu1 %v2230_v13  ;;  %2045 = vmatprep.mubr.msk.bf16.mxu1 %vm2324_vm1, %v2323_v36  ;;  %v807_v25 = vpack.c.bf16 %v2313_v23, %v2313_v23  ;;  %v2263_v13 = vld [vmem:[%s2870_s8 + $0x178] sm:$0xff]  }
 0x330   :  { %2031 = vmatprep.subr.bf16.mxu1 %v2323_v36  ;;  %2093 = vmatprep.subr.bf16.mxu0 %v2323_v36 }
 0x332   :  { %2094 = vmatpush3.bf16.msra.mxu0 %v2251_v30  ;;  %v2272_v30 = vld [vmem:[%s2870_s8 + $0x110] sm:$0xff]  }
 0x333   :  { %2032 = vmatpush3.bf16.msra.mxu1 %v2232_v15  ;;  %2095 = vmatprep.subr.bf16.mxu0 %v2323_v36 }
 0x334   :  { %2033 = vmatprep.subr.bf16.mxu1 %v2323_v36 }
 0x336   :  { %2096 = vmatpush3.bf16.msra.mxu0 %v2253_v32  ;;  %v2273_v32 = vld [vmem:[%s2870_s8 + $0x150] sm:$0xff]  }
 0x337   :  { %2034 = vmatpush3.bf16.msra.mxu1 %v2234_v17  ;;  %2097 = vmatprep.subr.bf16.mxu0 %v2323_v36  ;;  %v2264_v17 = vld [vmem:[%s2870_s8 + $0x130] sm:$0xff]  }
 0x338   :  { %2035 = vmatprep.subr.bf16.mxu1 %v2323_v36 }
 0x33a   :  { %2098 = vmatpush3.bf16.msra.mxu0 %v2255_v34  ;;  %v2274_v34 = vld [vmem:[%s2870_s8 + $0x108] sm:$0xff]  }
 0x33b   :  { %2036 = vmatpush3.bf16.msra.mxu1 %v2236_v19  ;;  %2099 = vmatprep.subr.bf16.mxu0 %v2323_v36  ;;  %v603_v19 = vrot.slane %v2587_v53, %v602_v16 }
 0x33c   :  { %2037 = vmatprep.subr.bf16.mxu1 %v2323_v36 }
 0x33d   :  { %v795_v23 = vadd.f32 %v2711_v42, %v603_v19 }
 0x33e   :  { %2100 = vmatpush3.bf16.msra.mxu0 %v2257_v37 }
 0x33f   :  { %2038 = vmatpush3.bf16.msra.mxu1 %v2238_v20  ;;  %2101 = vmatprep.subr.bf16.mxu0 %v2323_v36  ;;  %v606_v20 = vsub.s32 5, %v2576_v46 }
 0x340   :  { %2039 = vmatprep.subr.bf16.mxu1 %v2323_v36 }
 0x341   :  { %v607_v46 = vrot.slane %v2587_v53, %v606_v20  ;;  %v2269_v53 = vld [vmem:[%s2870_s8 + $0x160] sm:$0xff]  }
 0x342   :  { %2102 = vmatpush3.bf16.msra.mxu0 %v2259_v39  ;;  %v2277_v39 = vld [vmem:[%s2870_s8 + $0x140] sm:$0xff]  }
 0x343   :  { %2040 = vmatpush3.bf16.msra.mxu1 %v2240_v21  ;;  %2103 = vmatprep.subr.bf16.mxu0 %v2323_v36  ;;  %v2266_v21 = vld [vmem:[%s2870_s8 + $0x128] sm:$0xff]  }
 0x344   :  { %2041 = vmatprep.subr.bf16.mxu1 %v2323_v36 }
 0x346   :  { %2104 = vmatpush3.bf16.msra.mxu0 %v2261_v41 }
 0x347   :  { %2042 = vmatpush3.bf16.msra.mxu1 %v2242_v22  ;;  %2129 = vmatprep.subr.bf16.mxu0 %v2323_v36  ;;  %v2267_v22 = vld [vmem:[%s2870_s8 + $0x168] sm:$0xff]  }
 0x348   :  { %2043 = vmatprep.subr.bf16.mxu1 %v2323_v36 }
 0x34b   :  { %2044 = vmatpush3.bf16.msra.mxu1 %v2244_v24  ;;  %v2268_v24 = vld [vmem:[%s2870_s8 + $0x120] sm:$0xff]  }
 0x34c   :  { %2069 = vmatprep.subr.bf16.mxu1 %v2323_v36 }
 0x34e   :  { %2046 = vmatmul.mubr.bf16.vlgmr.msra.gmra.mxu1 %v807_v25  ;;  %v797_v25 = vadd.f32 %v2713_v43, %v607_v46 }
 0x34f   :  { %2070 = vmatpush3.bf16.msra.mxu1 %v2246_v26  ;;  %2085 = vmatprep.mubr.msk.bf16.mxu1 %vm2324_vm1, %v2323_v36  ;;  %v2270_v26 = vld [vmem:[%s2870_s8 + $0x118] sm:$0xff]  }
 0x350   :  { %2071 = vmatprep.subr.bf16.mxu1 %v2323_v36 }
 0x353   :  { %2072 = vmatpush3.bf16.msra.mxu1 %v2248_v27 }
 0x354   :  { %2073 = vmatprep.subr.bf16.mxu1 %v2323_v36 }
 0x357   :  { %2074 = vmatpush3.bf16.msra.mxu1 %v2250_v29 }
 0x358   :  { %2075 = vmatprep.subr.bf16.mxu1 %v2323_v36 }
 0x35b   :  { %2076 = vmatpush3.bf16.msra.mxu1 %v2252_v31 }
 0x35c   :  { %2077 = vmatprep.subr.bf16.mxu1 %v2323_v36 }
 0x35f   :  { %2078 = vmatpush3.bf16.msra.mxu1 %v2254_v33 }
 0x360   :  { %2079 = vmatprep.subr.bf16.mxu1 %v2323_v36 }
 0x363   :  { %2080 = vmatpush3.bf16.msra.mxu1 %v2256_v35  ;;  %v2275_v35 = vld [vmem:[%s2870_s8 + $0x148] sm:$0xff]  }
 0x364   :  { %2081 = vmatprep.subr.bf16.mxu1 %v2323_v36 }
 0x367   :  { %2082 = vmatpush3.bf16.msra.mxu1 %v2258_v38  ;;  %v2276_v38 = vld [vmem:[%s2870_s8 + $0x100] sm:$0xff]  }
 0x368   :  { %2083 = vmatprep.subr.bf16.mxu1 %v2323_v36 }
 0x36b   :  { %2084 = vmatpush3.bf16.msra.mxu1 %v2260_v40 }
 0x36c   :  { %2109 = vmatprep.subr.bf16.mxu1 %v2323_v36 }
 0x3e6   :  { %v2715_v48 = vpop.f32.mrf.mxu1 }
 0x3e7   :  { %1558 = vperm.xlu0 %2159, %v2715_v48   ;;  %1543 = vperm.xlu1 %2158, %v2715_v48  }
 0x3e8   :  { %v553_v50 = vpop.f32.mrf.mxu1 }
 0x3e9   :  { %v2721_v54 = vpop.f32.mrf.mxu0 }
 0x3ea   :  { %v2723_v55 = vpop.f32.mrf.mxu1 }
 0x3eb   :  { %2161 = vset.pattern.permute.xlu0 %v2326_v56  ;;  %2160 = vset.pattern.permute.xlu1 %v2327_v57  ;;  %v2067_v59 = vpop.f32.mrf.mxu0 }
 0x3ec   :  { %1590 = vperm.xlu0 %2161, %v2715_v48   ;;  %1574 = vperm.xlu1 %2160, %v2715_v48   ;;  %v2729_v60 = vpop.f32.mrf.mxu1 }
 0x3ed   :  { %v1019_v62 = vpop.f32.mrf.mxu0 }
 0x3ee   :  { %v753_v63 = vpop.f32.mrf.mxu1 }
 0x3ef   :  { %v754_v1 = vadd.f32 %v753_v63, %v595_v58  ;;  %v2068_v2 = vpop.f32.mrf.mxu0 }
 0x3f0   :  { %2163 = vset.pattern.permute.xlu0 %v2322_v0  ;;  %2162 = vset.pattern.permute.xlu1 %v2328_v3  ;;  %v755_v4 = vpop.f32.mrf.mxu1 }
 0x3f1   :  { %2314 = vtanh.f32 %v754_v1  ;;  %v756_v5 = vadd.f32 %v755_v4, %v599_v61  ;;  %1606 = vperm.xlu1 %2162, %v2715_v48   ;;  %1444 = vperm.xlu0 %2163, %v553_v50  }
 0x3f2   :  { %v757_v6 = vpop.f32.mrf.mxu1 }
 0x3f3   :  { %2316 = vtanh.f32 %v756_v5 }
 0x3f4   :  { %v758_v7 = vpop.f32.mrf.mxu1  ;;  %2318 = vtanh.f32 %v795_v23 }
 0x3f5   :  { %2165 = vset.pattern.permute.xlu1 %v2327_v57  ;;  %2164 = vset.pattern.permute.xlu0 %v2325_v44  ;;  %2320 = vtanh.f32 %v797_v25 }
 0x3f6   :  { %1475 = vperm.xlu1 %2165, %v553_v50   ;;  %1459 = vperm.xlu0 %2164, %v553_v50  }
 0x3fa   :  { %2166 = vset.pattern.permute.xlu1 %v2326_v56  ;;  %2168 = vset.pattern.permute.xlu0 %v2329_v8 }
 0x3fb   :  { %1491 = vperm.xlu1 %2166, %v553_v50   ;;  %1523 = vperm.xlu0 %2168, %v553_v50  }
 0x3fe   :  { %v2315_v9 = vpop.eup %2314 }
 0x3ff   :  { %v809_v11 = vpack.c.bf16 %v2315_v9, %v2315_v9  ;;  %2167 = vset.pattern.permute.xlu1 %v2328_v3  ;;  %2171 = vset.pattern.permute.xlu0 %v2327_v57 }
 0x400   :  { %v2317_v12 = vpop.eup %2316  ;;  %1507 = vperm.xlu1 %2167, %v553_v50   ;;  %1578 = vperm.xlu0 %2171, %v2723_v55  }
 0x401   :  { %v810_v15 = vpack.c.bf16 %v2317_v12, %v2317_v12  ;;  %2086 = vmatmul.mubr.bf16.vlgmr.msra.gmra.mxu1 %v809_v11  ;;  %v2319_v37 = vpop.eup %2318 }
 0x402   :  { %2110 = vmatpush3.bf16.msra.mxu1 %v2262_v10  ;;  %2125 = vmatprep.mubr.msk.bf16.mxu1 %vm2324_vm1, %v2323_v36  ;;  %v811_v40 = vpack.c.bf16 %v2319_v37, %v2319_v37 }
 0x403   :  { %2106 = vmatmul.mubr.bf16.vlgmr.msra.gmra.mxu0 %v810_v15  ;;  %2111 = vmatprep.subr.bf16.mxu1 %v2323_v36 }
 0x404   :  { %2130 = vmatpush3.bf16.msra.mxu0 %v2263_v13  ;;  %2169 = vset.pattern.permute.xlu1 %v2322_v0 }
 0x405   :  { %1479 = vperm.xlu0 %2171, %v2729_v60   ;;  %1548 = vperm.xlu1 %2169, %v2723_v55  }
 0x406   :  { %2112 = vmatpush3.bf16.msra.mxu1 %v2264_v17  ;;  %2131 = vmatprep.subr.bf16.mxu0 %v2323_v36 }
 0x407   :  { %2113 = vmatprep.subr.bf16.mxu1 %v2323_v36  ;;  %2145 = vmatprep.mubr.msk.bf16.mxu0 %vm2324_vm1, %v2323_v36 }
 0x408   :  { %2132 = vmatpush3.bf16.msra.mxu0 %v2265_v18 }
 0x409   :  { %2177 = vset.pattern.permute.xlu0 %v2328_v3  ;;  %2170 = vset.pattern.permute.xlu1 %v2325_v44 }
 0x40a   :  { %1511 = vperm.xlu0 %2177, %v2729_v60   ;;  %2114 = vmatpush3.bf16.msra.mxu1 %v2266_v21 }
 0x40b   :  { %1562 = vperm.xlu1 %2170, %v2723_v55   ;;  %2133 = vmatprep.subr.bf16.mxu0 %v2323_v36 }
 0x40c   :  { %2134 = vmatpush3.bf16.msra.mxu0 %v2267_v22  ;;  %2115 = vmatprep.subr.bf16.mxu1 %v2323_v36 }
 0x40d   :  { %2135 = vmatprep.subr.bf16.mxu0 %v2323_v36 }
 0x40e   :  { %2179 = vset.pattern.permute.xlu0 %v2329_v8  ;;  %2116 = vmatpush3.bf16.msra.mxu1 %v2268_v24  ;;  %v911_v27 = vpop.f32.mrf.mxu1 }
 0x40f   :  { %2172 = vset.pattern.permute.xlu1 %v2326_v56  ;;  %1626 = vperm.xlu0 %2179, %v2723_v55   ;;  %v1455_v57 = vrot.slane %v911_v27, %v2614_v14 }
 0x410   :  { %1594 = vperm.xlu1 %2172, %v2723_v55   ;;  %2136 = vmatpush3.bf16.msra.mxu0 %v2269_v53  ;;  %v2047_v29 = vpop.f32.mrf.mxu1 }
 0x411   :  { %2117 = vmatprep.subr.bf16.mxu1 %v2323_v36  ;;  %2137 = vmatprep.subr.bf16.mxu0 %v2323_v36 }
 0x412   :  { %2118 = vmatpush3.bf16.msra.mxu1 %v2270_v26  ;;  %v914_v31 = vpop.f32.mrf.mxu1 }
 0x413   :  { %2119 = vmatprep.subr.bf16.mxu1 %v2323_v36 }
 0x414   :  { %2173 = vset.pattern.permute.xlu1 %v2328_v3  ;;  %2138 = vmatpush3.bf16.msra.mxu0 %v2271_v28  ;;  %v2048_v33 = vpop.f32.mrf.mxu1 }
 0x415   :  { %1610 = vperm.xlu1 %2173, %v2723_v55   ;;  %2139 = vmatprep.subr.bf16.mxu0 %v2323_v36 }
 0x416   :  { %2120 = vmatpush3.bf16.msra.mxu1 %v2272_v30 }
 0x417   :  { %2121 = vmatprep.subr.bf16.mxu1 %v2323_v36 }
 0x418   :  { %2140 = vmatpush3.bf16.msra.mxu0 %v2273_v32 }
 0x419   :  { %2174 = vset.pattern.permute.xlu1 %v2322_v0  ;;  %2141 = vmatprep.subr.bf16.mxu0 %v2323_v36  ;;  %v2321_v0 = vpop.eup %2320 }
 0x41a   :  { %1449 = vperm.xlu1 %2174, %v2729_v60   ;;  %2122 = vmatpush3.bf16.msra.mxu1 %v2274_v34  ;;  %v812_v41 = vpack.c.bf16 %v2321_v0, %v2321_v0 }
 0x41b   :  { %2123 = vmatprep.subr.bf16.mxu1 %v2323_v36 }
 0x41c   :  { %2142 = vmatpush3.bf16.msra.mxu0 %v2275_v35 }
 0x41d   :  { %2143 = vmatprep.subr.bf16.mxu0 %v2323_v36  ;;  %v1554_v36 = vrot.slane %v911_v27, %v2582_v51 }
 0x41e   :  { %2175 = vset.pattern.permute.xlu1 %v2325_v44  ;;  %2124 = vmatpush3.bf16.msra.mxu1 %v2276_v38  ;;  %v1568_v44 = vrot.slane %v2721_v54, %v2582_v51 }
 0x41f   :  { %1463 = vperm.xlu1 %2175, %v2729_v60  }
 0x420   :  { %2144 = vmatpush3.bf16.msra.mxu0 %v2277_v39 }
 0x421   :  { %2126 = vmatmul.mubr.bf16.vlgmr.msra.gmra.mxu1 %v811_v40 }
 0x423   :  { %2176 = vset.pattern.permute.xlu1 %v2326_v56  ;;  %2146 = vmatmul.mubr.bf16.vlgmr.msra.gmra.mxu0 %v812_v41 }
 0x424   :  { %1495 = vperm.xlu1 %2176, %v2729_v60  }
 0x428   :  { %2178 = vset.pattern.permute.xlu1 %v2329_v8 }
 0x429   :  { %1527 = vperm.xlu1 %2178, %v2729_v60  }
 0x42d   :  { %1622 = vperm.xlu1 %2178, %v2715_v48   ;;  %v1469_v48 = vrot.slane %v2721_v54, %v2614_v14 }
 0x462   :  { %v1559_v42 = vpop.permute.xlu0 %1558  ;;  %v1544_v43 = vpop.permute.xlu1 %1543 }
 0x463   :  { %v1569_v45 = vmul.f32 %v1568_v44, %v1559_v42  ;;  %v1555_v47 = vmul.f32 %v1554_v36, %v1544_v43 }
 0x465   :  { %v1571_v49 = vadd.f32 %v1569_v45, %v1555_v47 }
 0x467   :  { %v1591_v50 = vpop.permute.xlu0 %1590  ;;  %v1575_v52 = vpop.permute.xlu1 %1574 }
 0x46c   :  { %v2837_v55 = vpop.permute.xlu1 %1606  ;;  %v1445_v56 = vpop.permute.xlu0 %1444 }
 0x46d   :  { %v1456_v60 = vmul.f32 %v1455_v57, %v1445_v56 }
 0x471   :  { %v1476_v58 = vpop.permute.xlu1 %1475  ;;  %v1460_v59 = vpop.permute.xlu0 %1459 }
 0x472   :  { %v1470_v61 = vmul.f32 %v1469_v48, %v1460_v59 }
 0x474   :  { %v1472_v62 = vadd.f32 %v1470_v61, %v1456_v60 }
 0x476   :  { %v1492_v63 = vpop.permute.xlu1 %1491  ;;  %v1524_v22 = vpop.permute.xlu0 %1523 }
 0x47b   :  { %v1508_v1 = vpop.permute.xlu1 %1507  ;;  %v1579_v23 = vpop.permute.xlu0 %1578 }
 0x480   :  { %v1549_v2 = vpop.permute.xlu1 %1548  ;;  %v1480_v53 = vpop.permute.xlu0 %1479 }
 0x481   :  { %v1556_v4 = vmul.f32 %v1554_v36, %v1549_v2 }
 0x485   :  { %v1512_v0 = vpop.permute.xlu0 %1511 }
 0x486   :  { %v1563_v3 = vpop.permute.xlu1 %1562 }
 0x487   :  { %v1570_v5 = vmul.f32 %v1568_v44, %v1563_v3 }
 0x489   :  { %v1572_v6 = vadd.f32 %v1570_v5, %v1556_v4 }
 0x48b   :  { %v1595_v7 = vpop.permute.xlu1 %1594 }
 0x490   :  { %v1611_v8 = vpop.permute.xlu1 %1610 }
 0x495   :  { %v1450_v9 = vpop.permute.xlu1 %1449 }
 0x496   :  { %v1457_v11 = vmul.f32 %v1455_v57, %v1450_v9 }
 0x49a   :  { %v1464_v10 = vpop.permute.xlu1 %1463 }
 0x49b   :  { %v1471_v12 = vmul.f32 %v1469_v48, %v1464_v10 }
 0x49d   :  { %v1473_v13 = vadd.f32 %v1471_v12, %v1457_v11 }
 0x49f   :  { %v1496_v25 = vpop.permute.xlu1 %1495 }
 0x4a4   :  { %v1528_v41 = vpop.permute.xlu1 %1527 }
 0x4a8   :  { %v1623_v2 = vpop.permute.xlu1 %1622 }
 0x4c1   :  { %v1121_v54 = vpop.f32.mrf.mxu1 }
 0x4c2   :  { %v1485_v46 = vrot.slane %v1121_v54, %v2614_v14  ;;  %v1584_v24 = vrot.slane %v1121_v54, %v2582_v51 }
 0x4c3   :  { %v2087_v15 = vpop.f32.mrf.mxu1  ;;  %v1226_v16 = vpop.f32.mrf.mxu0 }
 0x4c4   :  { %v1486_v26 = vmul.f32 %v1485_v46, %v1476_v58  ;;  %v1487_v27 = vmul.f32 %v1485_v46, %v1480_v53  ;;  %v1585_v28 = vmul.f32 %v1584_v24, %v1575_v52  ;;  %v1586_v29 = vmul.f32 %v1584_v24, %v1579_v23 }
 0x4c5   :  { %v1124_v17 = vpop.f32.mrf.mxu1  ;;  %v2107_v18 = vpop.f32.mrf.mxu0  ;;  %v1501_v30 = vrot.slane %v1226_v16, %v2614_v14  ;;  %v1600_v31 = vrot.slane %v1226_v16, %v2582_v51 }
 0x4c6   :  { %v1488_v32 = vadd.f32 %v1486_v26, %v1472_v62  ;;  %v1489_v33 = vadd.f32 %v1487_v27, %v1473_v13  ;;  %v1587_v34 = vadd.f32 %v1585_v28, %v1571_v49  ;;  %v1588_v35 = vadd.f32 %v1586_v29, %v1572_v6 }
 0x4c7   :  { %v2088_v19 = vpop.f32.mrf.mxu1  ;;  %v1229_v20 = vpop.f32.mrf.mxu0  ;;  %v1502_v37 = vmul.f32 %v1501_v30, %v1492_v63  ;;  %v1503_v38 = vmul.f32 %v1501_v30, %v1496_v25  ;;  %v1601_v39 = vmul.f32 %v1600_v31, %v1591_v50  ;;  %v1602_v40 = vmul.f32 %v1600_v31, %v1595_v7 }
 0x4c8   :  { %v1627_v63 = vpop.permute.xlu0 %1626 }
 0x4c9   :  { %v2108_v21 = vpop.f32.mrf.mxu0  ;;  %v1504_v43 = vadd.f32 %v1502_v37, %v1488_v32  ;;  %v1505_v45 = vadd.f32 %v1503_v38, %v1489_v33  ;;  %v1603_v47 = vadd.f32 %v1601_v39, %v1587_v34  ;;  %v1604_v52 = vadd.f32 %v1602_v40, %v1588_v35 }
 0x4e1   :  { %v1331_v36 = vpop.f32.mrf.mxu1 }
 0x4e2   :  { %v1517_v44 = vrot.slane %v1331_v36, %v2614_v14  ;;  %v1616_v42 = vrot.slane %v1331_v36, %v2582_v51 }
 0x4e3   :  { %v2127_v56 = vpop.f32.mrf.mxu1  ;;  %v1436_v57 = vpop.f32.mrf.mxu0 }
 0x4e4   :  { %v1518_v48 = vmul.f32 %v1517_v44, %v1508_v1  ;;  %v1519_v49 = vmul.f32 %v1517_v44, %v1512_v0  ;;  %v1617_v58 = vmul.f32 %v1616_v42, %v2837_v55  ;;  %v1618_v59 = vmul.f32 %v1616_v42, %v1611_v8 }
 0x4e5   :  { %v1533_v50 = vrot.slane %v1436_v57, %v2614_v14  ;;  %v1632_v60 = vrot.slane %v1436_v57, %v2582_v51  ;;  %v1334_v61 = vpop.f32.mrf.mxu1  ;;  %v2147_v62 = vpop.f32.mrf.mxu0 }
 0x4e6   :  { %v1520_v3 = vadd.f32 %v1518_v48, %v1504_v43  ;;  %v1521_v4 = vadd.f32 %v1519_v49, %v1505_v45  ;;  %v1619_v5 = vadd.f32 %v1617_v58, %v1603_v47  ;;  %v1620_v6 = vadd.f32 %v1618_v59, %v1604_v52 }
 0x4e7   :  { %v1534_v7 = vmul.f32 %v1533_v50, %v1524_v22  ;;  %v1535_v9 = vmul.f32 %v1533_v50, %v1528_v41  ;;  %v1633_v10 = vmul.f32 %v1632_v60, %v1623_v2  ;;  %v1634_v1 = vmul.f32 %v1632_v60, %v1627_v63  ;;  %v2128_v11 = vpop.f32.mrf.mxu1  ;;  %v1439_v12 = vpop.f32.mrf.mxu0 }
 0x4e9   :  { %v1536_v55 = vadd.f32 %v1534_v7, %v1520_v3  ;;  %v1537_v8 = vadd.f32 %v1535_v9, %v1521_v4  ;;  %v1635_v14 = vadd.f32 %v1633_v10, %v1619_v5  ;;  %v1636_v13 = vadd.f32 %v1634_v1, %v1620_v6  ;;  %v2148_v51 = vpop.f32.mrf.mxu0 }
 0x4eb   :  { %1539 = vst.msk [vmem:[%s2872_s9] sm:$0xff] %vm1538_vm2, %v1536_v55  ;;  %1540 = vst.msk [vmem:[%s2872_s9 + $0x8] sm:$0xff] %vm1538_vm2, %v1537_v8 }
 0x4ec   :  { %1637 = vst.msk [vmem:[%s2872_s9 + $0x10] sm:$0xff] %vm1538_vm2, %v1635_v14  ;;  %1638 = vst.msk [vmem:[%s2872_s9 + $0x18] sm:$0xff] %vm1538_vm2, %v1636_v13 }

</bundles_post_ra>
